<compile_context>
chip_gen: v6e
topology: v6e:2x2x1
jax: 0.10.0
libtpu: 0.0.40
codegen_flags: <defaults>
</compile_context>

<pallas_src>
import functools

import jax
import jax.numpy as jnp
from jax.experimental import pallas as pl
from jax.experimental.pallas import tpu as pltpu

LANE = 128          # padded feature width (lane-dense)
TM_PREF = 256       # preferred output-node row tile  (v5e/v6e ladder; halve on v7x)
TK_PREF = 512       # preferred A-column (K) tile


def _round_up(x, m):
    return ((x + m - 1) // m) * m


# ----------------------------- Pallas kernels ------------------------------ #

def _sage_layer_kernel(a_ref, hk_ref, hi_ref, ws_ref, wn_ref, b_ref, o_ref, acc_ref):
    """One SAGEConv('mean') layer + ReLU, tiled over (output-node rows, A columns).

    a_ref  : (tm, tk)   bf16  row-normalized adjacency tile
    hk_ref : (tk, F)    bf16  node features for the current K tile (neighbour side)
    hi_ref : (tm, F)    bf16  node features for the current row tile (self side)
    ws_ref : (F, F)     bf16  W_self   (full-resident)
    wn_ref : (F, F)     bf16  W_neigh  (full-resident)
    b_ref  : (1, F)     f32   bias
    o_ref  : (tm, F)    bf16  ReLU(h@Ws + (A@h)@Wn + b)
    acc_ref: (tm, F)    f32   VMEM accumulator for the neighbour aggregation
    """
    k = pl.program_id(1)

    @pl.when(k == 0)
    def _():
        acc_ref[...] = jnp.zeros_like(acc_ref)

    # Accumulate mean-aggregated neighbour features: sum_k A[i_tile, k_tile] @ h[k_tile].
    acc_ref[...] += jnp.dot(a_ref[...], hk_ref[...],
                            preferred_element_type=jnp.float32)

    @pl.when(k == pl.num_programs(1) - 1)
    def _():
        neigh = acc_ref[...].astype(hk_ref.dtype)                   # bf16 MXU operand
        z = (jnp.dot(hi_ref[...], ws_ref[...], preferred_element_type=jnp.float32)
             + jnp.dot(neigh, wn_ref[...], preferred_element_type=jnp.float32)
             + b_ref[...])
        o_ref[...] = jnp.maximum(z, 0.0).astype(o_ref.dtype)        # ReLU in f32


def _pool_pred_kernel(h_ref, wp_ref, bp_ref, o_ref, acc_ref, *, tm, n_nodes):
    """AvgPooling over real nodes + prediction Linear, tiled over node rows.

    h_ref : (tm, F) bf16    wp_ref: (F, F) bf16    bp_ref: (1, F) f32
    o_ref : (1, F)  f32     acc_ref: (1, F) f32 scratch
    """
    i = pl.program_id(0)

    @pl.when(i == 0)
    def _():
        acc_ref[...] = jnp.zeros_like(acc_ref)

    # Mask out padded node rows (they carry ReLU(bias), not zeros).
    row = i * tm + jax.lax.broadcasted_iota(jnp.int32, (tm, 1), 0)
    mask = (row < n_nodes).astype(jnp.float32)
    acc_ref[...] += jnp.sum(h_ref[...].astype(jnp.float32) * mask,
                            axis=0, keepdims=True)

    @pl.when(i == pl.num_programs(0) - 1)
    def _():
        pooled = (acc_ref[...] * (1.0 / n_nodes)).astype(wp_ref.dtype)
        o_ref[...] = (jnp.dot(pooled, wp_ref[...],
                              preferred_element_type=jnp.float32)
                      + bp_ref[...]).astype(o_ref.dtype)


# ------------------------------ JAX wrapper -------------------------------- #

def _pad2d(x, rows, cols):
    out = jnp.zeros((rows, cols), jnp.float32)
    return out.at[: x.shape[0], : x.shape[1]].set(x.astype(jnp.float32))


def prepare_params(layer_params, w_pred, b_pred):
    """One-time padding / dtype conversion of parameters (not redone per forward call)."""
    layers = []
    for (w_s, w_n, b) in layer_params:
        layers.append((
            _pad2d(w_s, LANE, LANE).astype(jnp.bfloat16),   # W_self
            _pad2d(w_n, LANE, LANE).astype(jnp.bfloat16),   # W_neigh
            _pad2d(b, 1, LANE),                              # bias (f32)
        ))
    return {
        "layers": layers,
        "pred": (_pad2d(w_pred, LANE, LANE).astype(jnp.bfloat16),
                 _pad2d(b_pred, 1, LANE)),
        "n_classes": w_pred.shape[1],
    }


def _pick_tiles(n):
    if n <= TM_PREF:
        n_pad = _round_up(n, LANE)
        return n_pad, min(TM_PREF, n_pad), min(TK_PREF, n_pad)
    n_pad = _round_up(n, TK_PREF)
    return n_pad, TM_PREF, TK_PREF


def _layer_vmem_bytes(tm, tk):
    bf2, f4, dbuf = 2, 4, 2
    in_b = dbuf * (tm * tk * bf2 + tk * LANE * bf2 + tm * LANE * bf2
                   + 2 * LANE * LANE * bf2 + LANE * f4)
    out_b = dbuf * tm * LANE * bf2
    acc_b = tm * LANE * f4
    return in_b + out_b + acc_b + (8 << 20)   # + headroom for compiler temps


def graphsage_forward(a_norm, h0, prepared):
    n = h0.shape[0]
    n_pad, tm, tk = _pick_tiles(n)

    # Pad to lane-dense bf16 operands (zero padding is exact for the matmuls).
    a_pad = jnp.zeros((n_pad, n_pad), jnp.bfloat16).at[:n, :n].set(
        a_norm.astype(jnp.bfloat16))
    h = jnp.zeros((n_pad, LANE), jnp.bfloat16).at[:n, : h0.shape[1]].set(
        h0.astype(jnp.bfloat16))

    layer_call = pl.pallas_call(
        _sage_layer_kernel,
        out_shape=jax.ShapeDtypeStruct((n_pad, LANE), jnp.bfloat16),
        grid_spec=pltpu.PrefetchScalarGridSpec(
            num_scalar_prefetch=0,
            grid=(n_pad // tm, n_pad // tk),
            in_specs=[
                pl.BlockSpec((tm, tk), lambda i, k: (i, k)),       # A tile
                pl.BlockSpec((tk, LANE), lambda i, k: (k, 0)),     # h (neighbour side)
                pl.BlockSpec((tm, LANE), lambda i, k: (i, 0)),     # h (self side)
                pl.BlockSpec((LANE, LANE), lambda i, k: (0, 0)),   # W_self (resident)
                pl.BlockSpec((LANE, LANE), lambda i, k: (0, 0)),   # W_neigh (resident)
                pl.BlockSpec((1, LANE), lambda i, k: (0, 0)),      # bias
            ],
            out_specs=pl.BlockSpec((tm, LANE), lambda i, k: (i, 0)),
            scratch_shapes=[pltpu.VMEM((tm, LANE), jnp.float32)],
        ),
        compiler_params=pltpu.CompilerParams(
            dimension_semantics=("parallel", "arbitrary"),
            vmem_limit_bytes=_layer_vmem_bytes(tm, tk),
        ),
    )

    for (ws, wn, b) in prepared["layers"]:
        h = layer_call(a_pad, h, h, ws, wn, b)

    wp, bp = prepared["pred"]
    pool_call = pl.pallas_call(
        functools.partial(_pool_pred_kernel, tm=tm, n_nodes=n),
        out_shape=jax.ShapeDtypeStruct((1, LANE), jnp.float32),
        grid_spec=pltpu.PrefetchScalarGridSpec(
            num_scalar_prefetch=0,
            grid=(n_pad // tm,),
            in_specs=[
                pl.BlockSpec((tm, LANE), lambda i: (i, 0)),
                pl.BlockSpec((LANE, LANE), lambda i: (0, 0)),
                pl.BlockSpec((1, LANE), lambda i: (0, 0)),
            ],
            out_specs=pl.BlockSpec((1, LANE), lambda i: (0, 0)),
            scratch_shapes=[pltpu.VMEM((1, LANE), jnp.float32)],
        ),
        compiler_params=pltpu.CompilerParams(
            dimension_semantics=("arbitrary",),
            vmem_limit_bytes=8 << 20,
        ),
    )
    out_pad = pool_call(h, wp, bp)
    return out_pad[:, : prepared["n_classes"]]


# ----------------------------------- main ----------------------------------- #

if __name__ == "__main__":
    # Small, forward-consistent config.
    N = 64          # number of nodes in the (single) graph
    in_feats = 16
    n_hidden = 32
    n_classes = 8
    n_layers = 3    # forward uses layers 0 .. n_layers-2 (last SAGEConv unused in forward)

    key = jax.random.PRNGKey(0)
    k_adj, k_h, *k_w = jax.random.split(key, 2 + 4 * (n_layers - 1) + 2)

    # Deterministic synthetic graph: random directed adjacency, row-normalized.
    adj = (jax.random.uniform(k_adj, (N, N)) < 0.2).astype(jnp.float32)
    adj = adj * (1.0 - jnp.eye(N, dtype=jnp.float32))            # no self loops
    deg = jnp.sum(adj, axis=1, keepdims=True)                    # in-degree per dst node
    a_norm = adj / jnp.where(deg > 0, deg, 1.0)                  # zero rows for isolated nodes

    # Node features.
    h0 = jax.random.normal(k_h, (N, in_feats), dtype=jnp.float32)

    # Deterministic parameter init (shapes from module __init__).
    def lin_init(k, fan_in, fan_out):
        scale = 1.0 / jnp.sqrt(jnp.float32(fan_in))
        return scale * jax.random.normal(k, (fan_in, fan_out), dtype=jnp.float32)

    layer_dims = [(in_feats, n_hidden)] + [(n_hidden, n_hidden)] * (n_layers - 2)
    layer_params = []
    ki = 0
    for (fi, fo) in layer_dims:
        w_self = lin_init(k_w[ki], fi, fo); ki += 1
        w_neigh = lin_init(k_w[ki], fi, fo); ki += 1
        bias = jnp.zeros((1, fo), dtype=jnp.float32)
        layer_params.append((w_self, w_neigh, bias))
        ki += 2

    w_pred = lin_init(k_w[-2], n_hidden, n_classes)
    b_pred = 0.01 * jax.random.normal(k_w[-1], (1, n_classes), dtype=jnp.float32)

    # Pad / stack parameters once (not per forward call).
    prepared = prepare_params(layer_params, w_pred, b_pred)

    # Run the tiled Pallas forward.
    out = graphsage_forward(a_norm, h0, prepared)
    out = jax.block_until_ready(out)

    # Reference check in plain JAX (f32). Tolerance loosened for bf16 MXU operands.
    h_ref = h0
    for (w_s, w_n, b) in layer_params:
        h_ref = jnp.maximum(h_ref @ w_s + (a_norm @ h_ref) @ w_n + b, 0.0)
    ref = jnp.mean(h_ref, axis=0, keepdims=True) @ w_pred + b_pred

    assert out.shape == (1, n_classes)
    assert jnp.allclose(out, ref, atol=5e-2, rtol=5e-2), (
        f"max abs err {jnp.max(jnp.abs(out - ref))}")
    print("KERNEL_OK")
</pallas_src>

<mosaic_0001>
module attributes {stable_mosaic.version = 11 : i64} {
  func.func @_sage_layer_kernel(%arg0: i32, %arg1: i32, %arg2: memref<128x128xbf16, #tpu.memory_space<vmem>>, %arg3: memref<128x128xbf16, #tpu.memory_space<vmem>>, %arg4: memref<128x128xbf16, #tpu.memory_space<vmem>>, %arg5: memref<128x128xbf16, #tpu.memory_space<vmem>>, %arg6: memref<128x128xbf16, #tpu.memory_space<vmem>>, %arg7: memref<1x128xf32, #tpu.memory_space<vmem>>, %arg8: memref<128x128xbf16, #tpu.memory_space<vmem>>, %arg9: memref<128x128xf32, #tpu.memory_space<vmem>>) attributes {dimension_semantics = [#tpu.dimension_semantics<parallel>, #tpu.dimension_semantics<arbitrary>], iteration_bounds = array<i64: 1, 1>, scalar_prefetch = 0 : i64, scratch_operands = 1 : i64, tpu.core_type = #tpu.core_type<tc>, window_params = [{transform_indices = @transform_0, window_bounds = array<i64: 128, 128>}, {transform_indices = @transform_1, window_bounds = array<i64: 128, 128>}, {transform_indices = @transform_2, window_bounds = array<i64: 128, 128>}, {pipeline_mode = #tpu.pipeline_mode<synchronous>, transform_indices = @transform_3, window_bounds = array<i64: 128, 128>}, {pipeline_mode = #tpu.pipeline_mode<synchronous>, transform_indices = @transform_4, window_bounds = array<i64: 128, 128>}, {pipeline_mode = #tpu.pipeline_mode<synchronous>, transform_indices = @transform_5, window_bounds = array<i64: 1, 128>}, {transform_indices = @transform_6, window_bounds = array<i64: 128, 128>}]} {
    %c0_i32 = arith.constant 0 : i32
    %0 = arith.cmpi eq, %arg1, %c0_i32 : i32
    %1 = arith.extui %0 : i1 to i32
    %c0_i32_0 = arith.constant 0 : i32
    %2 = arith.cmpi ne, %1, %c0_i32_0 : i32
    scf.if %2 {
      %cst_10 = arith.constant 0.000000e+00 : f32
      %12 = vector.broadcast %cst_10 : f32 to vector<128x128xf32>
      %c0_11 = arith.constant 0 : index
      %c0_12 = arith.constant 0 : index
      %13 = vector.load %arg9[%c0_11, %c0_12] : memref<128x128xf32, #tpu.memory_space<vmem>>, vector<128x128xf32>
      tpu.vector_store %arg9[%c0_11, %c0_12], %12 {strides = array<i32>} : memref<128x128xf32, #tpu.memory_space<vmem>>, vector<128x128xf32>,
    } else {
    }
    %c0 = arith.constant 0 : index
    %c0_1 = arith.constant 0 : index
    %3 = vector.load %arg9[%c0, %c0_1] : memref<128x128xf32, #tpu.memory_space<vmem>>, vector<128x128xf32>
    %c0_2 = arith.constant 0 : index
    %c0_3 = arith.constant 0 : index
    %4 = vector.load %arg2[%c0_2, %c0_3] : memref<128x128xbf16, #tpu.memory_space<vmem>>, vector<128x128xbf16>
    %c0_4 = arith.constant 0 : index
    %c0_5 = arith.constant 0 : index
    %5 = vector.load %arg3[%c0_4, %c0_5] : memref<128x128xbf16, #tpu.memory_space<vmem>>, vector<128x128xbf16>
    %cst = arith.constant dense<0.000000e+00> : vector<128x128xf32>
    %6 = tpu.matmul %4, %5, %cst {dimension_numbers = #tpu.dot_dimension_numbers<[1], [0], [0], [1], [0, 0, 1, 1], [], []>} : vector<128x128xbf16>, vector<128x128xbf16>, vector<128x128xf32> -> vector<128x128xf32>
    %7 = arith.addf %3, %6 : vector<128x128xf32>
    %c0_6 = arith.constant 0 : index
    %c0_7 = arith.constant 0 : index
    %8 = vector.load %arg9[%c0_6, %c0_7] : memref<128x128xf32, #tpu.memory_space<vmem>>, vector<128x128xf32>
    tpu.vector_store %arg9[%c0_6, %c0_7], %7 {strides = array<i32>} : memref<128x128xf32, #tpu.memory_space<vmem>>, vector<128x128xf32>,
    %c0_i32_8 = arith.constant 0 : i32
    %9 = arith.cmpi eq, %arg1, %c0_i32_8 : i32
    %10 = arith.extui %9 : i1 to i32
    %c0_i32_9 = arith.constant 0 : i32
    %11 = arith.cmpi ne, %10, %c0_i32_9 : i32
    scf.if %11 {
      %c0_10 = arith.constant 0 : index
      %c0_11 = arith.constant 0 : index
      %12 = vector.load %arg9[%c0_10, %c0_11] : memref<128x128xf32, #tpu.memory_space<vmem>>, vector<128x128xf32>
      %13 = arith.truncf %12 : vector<128x128xf32> to vector<128x128xbf16>
      %c0_12 = arith.constant 0 : index
      %c0_13 = arith.constant 0 : index
      %14 = vector.load %arg4[%c0_12, %c0_13] : memref<128x128xbf16, #tpu.memory_space<vmem>>, vector<128x128xbf16>
      %c0_14 = arith.constant 0 : index
      %c0_15 = arith.constant 0 : index
      %15 = vector.load %arg5[%c0_14, %c0_15] : memref<128x128xbf16, #tpu.memory_space<vmem>>, vector<128x128xbf16>
      %cst_16 = arith.constant dense<0.000000e+00> : vector<128x128xf32>
      %16 = tpu.matmul %14, %15, %cst_16 {dimension_numbers = #tpu.dot_dimension_numbers<[1], [0], [0], [1], [0, 0, 1, 1], [], []>} : vector<128x128xbf16>, vector<128x128xbf16>, vector<128x128xf32> -> vector<128x128xf32>
      %c0_17 = arith.constant 0 : index
      %c0_18 = arith.constant 0 : index
      %17 = vector.load %arg6[%c0_17, %c0_18] : memref<128x128xbf16, #tpu.memory_space<vmem>>, vector<128x128xbf16>
      %cst_19 = arith.constant dense<0.000000e+00> : vector<128x128xf32>
      %18 = tpu.matmul %13, %17, %cst_19 {dimension_numbers = #tpu.dot_dimension_numbers<[1], [0], [0], [1], [0, 0, 1, 1], [], []>} : vector<128x128xbf16>, vector<128x128xbf16>, vector<128x128xf32> -> vector<128x128xf32>
      %19 = arith.addf %16, %18 : vector<128x128xf32>
      %c0_20 = arith.constant 0 : index
      %c0_21 = arith.constant 0 : index
      %20 = vector.load %arg7[%c0_20, %c0_21] : memref<1x128xf32, #tpu.memory_space<vmem>>, vector<1x128xf32>
      %21 = vector.broadcast %20 : vector<1x128xf32> to vector<128x128xf32>
      %22 = arith.addf %19, %21 : vector<128x128xf32>
      %cst_22 = arith.constant 0.000000e+00 : f32
      %23 = vector.broadcast %cst_22 : f32 to vector<128x128xf32>
      %24 = arith.maximumf %22, %23 : vector<128x128xf32>
      %25 = arith.truncf %24 : vector<128x128xf32> to vector<128x128xbf16>
      %c0_23 = arith.constant 0 : index
      %c0_24 = arith.constant 0 : index
      %26 = vector.load %arg8[%c0_23, %c0_24] : memref<128x128xbf16, #tpu.memory_space<vmem>>, vector<128x128xbf16>
      tpu.vector_store %arg8[%c0_23, %c0_24], %25 {strides = array<i32>} : memref<128x128xbf16, #tpu.memory_space<vmem>>, vector<128x128xbf16>,
    } else {
    }
    return
  }
  func.func @transform_0(%arg0: i32, %arg1: i32) -> (i32, i32) {
    %c0_i32 = arith.constant 0 : i32
    return %arg0, %arg1 : i32, i32
  }
  func.func @transform_1(%arg0: i32, %arg1: i32) -> (i32, i32) {
    %c0_i32 = arith.constant 0 : i32
    %c0_i32_0 = arith.constant 0 : i32
    return %arg1, %c0_i32 : i32, i32
  }
  func.func @transform_2(%arg0: i32, %arg1: i32) -> (i32, i32) {
    %c0_i32 = arith.constant 0 : i32
    %c0_i32_0 = arith.constant 0 : i32
    return %arg0, %c0_i32 : i32, i32
  }
  func.func @transform_3(%arg0: i32, %arg1: i32) -> (i32, i32) {
    %c0_i32 = arith.constant 0 : i32
    %c0_i32_0 = arith.constant 0 : i32
    %c0_i32_1 = arith.constant 0 : i32
    return %c0_i32, %c0_i32_0 : i32, i32
  }
  func.func @transform_4(%arg0: i32, %arg1: i32) -> (i32, i32) {
    %c0_i32 = arith.constant 0 : i32
    %c0_i32_0 = arith.constant 0 : i32
    %c0_i32_1 = arith.constant 0 : i32
    return %c0_i32, %c0_i32_0 : i32, i32
  }
  func.func @transform_5(%arg0: i32, %arg1: i32) -> (i32, i32) {
    %c0_i32 = arith.constant 0 : i32
    %c0_i32_0 = arith.constant 0 : i32
    %c0_i32_1 = arith.constant 0 : i32
    return %c0_i32, %c0_i32_0 : i32, i32
  }
  func.func @transform_6(%arg0: i32, %arg1: i32) -> (i32, i32) {
    %c0_i32 = arith.constant 0 : i32
    %c0_i32_0 = arith.constant 0 : i32
    return %arg0, %c0_i32 : i32, i32
  }
}

</mosaic_0001>

<bundles_post_ra>
// kernel: tpu_custom_call.1
= control target key start
LH: loop header
LB: loop body
LE: loop exit
PB: predicated region body
PF: predicated region fallthrough
CT: control target
= control target key end

     0   :  { %11 = vsyncpa [#allocation4], 0  ;;  %s1535_s0 = inlined_call_operand.hbm [shape: bf16[128,128], index: 0, kind: input, shape index: {}]   ;;  %s1536_s1 = inlined_call_operand.hbm [shape: bf16[128,128], index: 1, kind: input, shape index: {}]   ;;  %s1537_s2 = inlined_call_operand.hbm [shape: bf16[128,128], index: 2, kind: input, shape index: {}]   ;;  %s1538_s3 = inlined_call_operand.hbm [shape: bf16[128,128], index: 3, kind: input, shape index: {}]   ;;  %s1539_s4 = inlined_call_operand.hbm [shape: bf16[128,128], index: 4, kind: input, shape index: {}]   ;;  %s1540_s5 = inlined_call_operand.vmem [shape: f32[1,128], index: 5, kind: input, shape index: {}]   ;;  %s1541_s6 = inlined_call_operand.hbm [shape: bf16[128,128], index: 6, kind: output, shape index: {}]  }
   0x1   :  { %12 = vsyncpa [#allocation7], 0 }
   0x2   :  { %13 = vsyncpa [#allocation10], 0 }
   0x3   :  { %14 = vsyncpa [#allocation5], 0  ;;  %s1393_s21 = smov [#allocation6]   ;;  %s1394_s23 = smov [#allocation9]  }
   0x4   :  { %s32_s22 = sshll.u32 %s1393_s21, 4  ;;  %s56_s24 = sshll.u32 %s1394_s23, 4  ;;  %s33_s22 = int_to_ptr.vmem [resolvable:$true] %s32_s22  ;;  %s57_s24 = int_to_ptr.vmem [resolvable:$true] %s56_s24 }
   0x5   :  { %s1273_s25 = scalar_lea.vmem %s33_s22, 1024  ;;  %p1278_p1 = scmp.lt.s32.totalorder %s33_s22, %s33_s22 }
   0x6   :  { %p1274_p0 = scmp.ne.s32.totalorder %s33_s22, %s1273_s25  ;;  %p1279_p2 = scmp.lt.s32.totalorder %s1273_s25, %s1273_s25 }
   0x8   :  { %p1280_p3 = por %p1279_p2, %p1278_p1 }
   0xa   :  { %p1281_p4 = pnand %p1280_p3, %p1274_p0 }
   0xc   :  { %1284 = shalt.err (!%p1281_p4)
}
   0xd   :  { %s1395_s26 = smov 64   ;;  %s1396_s27 = smov 4  }
   0xe   :  { %38 = dma.hbm_to_vmem [thread:$0]  %s1536_s1, 1024, %s33_s22, [#allocation7], %s1395_s26, %s1395_s26, %s1396_s27  }
   0xf   :  { %s1293_s30 = scalar_lea.vmem %s57_s24, 1024  ;;  %p1298_p6 = scmp.lt.s32.totalorder %s57_s24, %s57_s24 }
  0x10   :  { %p1294_p5 = scmp.ne.s32.totalorder %s57_s24, %s1293_s30  ;;  %p1299_p7 = scmp.lt.s32.totalorder %s1293_s30, %s1293_s30 }
  0x12   :  { %p1300_p8 = por %p1299_p7, %p1298_p6 }
  0x14   :  { %p1301_p9 = pnand %p1300_p8, %p1294_p5 }
  0x16   :  { %1304 = shalt.err (!%p1301_p9)
}
  0x17   :  { %62 = dma.hbm_to_vmem [thread:$0]  %s1538_s3, 1024, %s57_s24, [#allocation10], %s1395_s26, %s1395_s26, %s1396_s27  }
  0x18   :  { %s1397_s9 = smov [#allocation3]   ;;  %s1398_s11 = smov [#allocation8]  }
  0x19   :  { %s20_s10 = sshll.u32 %s1397_s9, 4  ;;  %s44_s12 = sshll.u32 %s1398_s11, 4  ;;  %s21_s10 = int_to_ptr.vmem [resolvable:$true] %s20_s10  ;;  %s45_s12 = int_to_ptr.vmem [resolvable:$true] %s44_s12 }
  0x1a   :  { %s1313_s1 = scalar_lea.vmem %s21_s10, 1024  ;;  %p1318_p11 = scmp.lt.s32.totalorder %s21_s10, %s21_s10 }
  0x1b   :  { %p1314_p10 = scmp.ne.s32.totalorder %s21_s10, %s1313_s1  ;;  %p1319_p12 = scmp.lt.s32.totalorder %s1313_s1, %s1313_s1 }
  0x1d   :  { %p1320_p13 = por %p1319_p12, %p1318_p11 }
  0x1f   :  { %p1321_p0 = pnand %p1320_p13, %p1314_p10 }
  0x21   :  { %1324 = shalt.err (!%p1321_p0)
}
  0x22   :  { %26 = dma.hbm_to_vmem [thread:$0]  %s1535_s0, 1024, %s21_s10, [#allocation4], %s1395_s26, %s1395_s26, %s1396_s27  }
  0x23   :  { %s1333_s3 = scalar_lea.vmem %s45_s12, 1024  ;;  %p1338_p2 = scmp.lt.s32.totalorder %s45_s12, %s45_s12 }
  0x24   :  { %p1334_p1 = scmp.ne.s32.totalorder %s45_s12, %s1333_s3  ;;  %p1339_p3 = scmp.lt.s32.totalorder %s1333_s3, %s1333_s3 }
  0x26   :  { %p1340_p4 = por %p1339_p3, %p1338_p2 }
  0x28   :  { %p1341_p5 = pnand %p1340_p4, %p1334_p1 }
  0x2a   :  { %1344 = shalt.err (!%p1341_p5)
}
  0x2b   :  { %50 = dma.hbm_to_vmem [thread:$0]  %s1537_s2, 1024, %s45_s12, [#allocation7], %s1395_s26, %s1395_s26, %s1396_s27  }
  0x2c   :  { %s1399_s17 = smov [#allocation11]  }
  0x2d   :  { %s68_s18 = sshll.u32 %s1399_s17, 4  ;;  %s69_s18 = int_to_ptr.vmem [resolvable:$true] %s68_s18 }
  0x2e   :  { %s1353_s19 = scalar_lea.vmem %s69_s18, 1024  ;;  %p1358_p7 = scmp.lt.s32.totalorder %s69_s18, %s69_s18 }
  0x2f   :  { %p1354_p6 = scmp.ne.s32.totalorder %s69_s18, %s1353_s19  ;;  %p1359_p8 = scmp.lt.s32.totalorder %s1353_s19, %s1353_s19 }
  0x31   :  { %p1360_p9 = por %p1359_p8, %p1358_p7 }
  0x33   :  { %p1361_p10 = pnand %p1360_p9, %p1354_p6 }
  0x35   :  { %1364 = shalt.err (!%p1361_p10)
}
  0x36   :  { %74 = dma.hbm_to_vmem [thread:$0]  %s1539_s4, 1024, %s69_s18, [#allocation10], %s1395_s26, %s1395_s26, %s1396_s27  }
  0x37   :  { %1385 = dma.done.wait [#allocation4], 1024  }
  0x38   :  { %1386 = vsyncadd [#allocation4], 4294966272 }
  0x39   :  { %1387 = dma.done.wait [#allocation7], 2048  }
  0x3a   :  { %1388 = vsyncadd [#allocation7], 4294965248 }
  0x3b   :  { %1389 = dma.done.wait [#allocation10], 2048  }
  0x3c   :  { %1390 = vsyncadd [#allocation10], 4294965248  ;;  %v1225_v0 = vld [vmem:[#allocation6 + $0x38] sm:$0xff]   ;;  %v1226_v1 = vld [vmem:[#allocation6 + $0x30] sm:$0xff]  }
  0x3d   :  { %1105 = vmatprep.subr.bf16.mxu0 %v1225_v0  ;;  %v1227_v2 = vld [vmem:[#allocation6 + $0x28] sm:$0xff]   ;;  %v1228_v3 = vld [vmem:[#allocation6 + $0x20] sm:$0xff]   ;;  %v1229_v5 = vld [vmem:[#allocation6 + $0x18] sm:$0xff]  }
  0x3e   :  { %1106 = vmatpush3.bf16.msra.mxu0 %v1225_v0  ;;  %v1233_v4 = vld [vmem:[#allocation3] sm:$0xff]   ;;  %v1230_v6 = vld [vmem:[#allocation6 + $0x10] sm:$0xff]   ;;  %v1241_v7 = vld [vmem:[#allocation11 + $0x38] sm:$0xff]  }
  0x3f   :  { %1107 = vmatprep.subr.bf16.mxu0 %v1226_v1  ;;  %1121 = vmatprep.mubr.bf16.mxu0 %v1233_v4  ;;  %v1243_v8 = vld [vmem:[#allocation11 + $0x30] sm:$0xff]   ;;  %v1231_v9 = vld [vmem:[#allocation6 + $0x8] sm:$0xff]   ;;  %v1232_v11 = vld [vmem:[#allocation6] sm:$0xff]  }
  0x40   :  { %1137 = vmatprep.subr.bf16.mxu1 %v1241_v7  ;;  %v1245_v10 = vld [vmem:[#allocation11 + $0x28] sm:$0xff]   ;;  %v1247_v12 = vld [vmem:[#allocation11 + $0x20] sm:$0xff]   ;;  %v1466_v13 = vld [vmem:[#allocation9 + $0x38] sm:$0xff]  }
  0x41   :  { %1138 = vmatpush3.bf16.msra.mxu1 %v1241_v7  ;;  %v1249_v14 = vld [vmem:[#allocation11 + $0x18] sm:$0xff]   ;;  %v1234_v15 = vld [vmem:[#allocation3 + $0x8] sm:$0xff]   ;;  %v1235_v16 = vld [vmem:[#allocation3 + $0x10] sm:$0xff]  }
  0x42   :  { %1108 = vmatpush3.bf16.msra.mxu0 %v1226_v1  ;;  %1139 = vmatprep.subr.bf16.mxu1 %v1243_v8  ;;  %v1468_v17 = vld [vmem:[#allocation9 + $0x30] sm:$0xff]   ;;  %v1473_v19 = vld [vmem:[#allocation9 + $0x28] sm:$0xff]   ;;  %v1236_v20 = vld [vmem:[#allocation3 + $0x18] sm:$0xff]  }
  0x43   :  { %1109 = vmatprep.subr.bf16.mxu0 %v1227_v2  ;;  %v1251_v18 = vld [vmem:[#allocation11 + $0x10] sm:$0xff]   ;;  %v1237_v21 = vld [vmem:[#allocation3 + $0x20] sm:$0xff]   ;;  %v1481_v23 = vld [vmem:[#allocation9 + $0x18] sm:$0xff]  }
  0x44   :  { %v1477_v22 = vld [vmem:[#allocation9 + $0x20] sm:$0xff]   ;;  %v1238_v24 = vld [vmem:[#allocation3 + $0x28] sm:$0xff]   ;;  %v1239_v25 = vld [vmem:[#allocation3 + $0x30] sm:$0xff]  }
  0x45   :  { %1140 = vmatpush3.bf16.msra.mxu1 %v1243_v8  ;;  %v1485_v26 = vld [vmem:[#allocation9 + $0x10] sm:$0xff]   ;;  %v1240_v27 = vld [vmem:[#allocation3 + $0x38] sm:$0xff]   ;;  %v1253_v28 = vld [vmem:[#allocation11 + $0x8] sm:$0xff]  }
  0x46   :  { %1110 = vmatpush3.bf16.msra.mxu0 %v1227_v2  ;;  %1141 = vmatprep.subr.bf16.mxu1 %v1245_v10  ;;  %v1490_v29 = vld [vmem:[#allocation9 + $0x8] sm:$0xff]   ;;  %v1255_v30 = vld [vmem:[#allocation11] sm:$0xff]   ;;  %v1259_v34 = vld [vmem:[#allocation8 + $0x10] sm:$0xff]  }
  0x47   :  { %1111 = vmatprep.subr.bf16.mxu0 %v1228_v3  ;;  %v1256_v31 = vld [vmem:[#allocation9] sm:$0xff]   ;;  %v1258_v33 = vld [vmem:[#allocation8 + $0x8] sm:$0xff]   ;;  %v1260_v35 = vld [vmem:[#allocation8 + $0x18] sm:$0xff]  }
  0x48   :  { %v1257_v32 = vld [vmem:[#allocation8] sm:$0xff]   ;;  %v1262_v61 = vld [vmem:[#allocation8 + $0x28] sm:$0xff]   ;;  %v1263_v62 = vld [vmem:[#allocation8 + $0x30] sm:$0xff]  }
  0x49   :  { %1142 = vmatpush3.bf16.msra.mxu1 %v1245_v10  ;;  %v1261_v59 = vld [vmem:[#allocation8 + $0x20] sm:$0xff]   ;;  %v1264_v63 = vld [vmem:[#allocation8 + $0x38] sm:$0xff]  }
  0x4a   :  { %1112 = vmatpush3.bf16.msra.mxu0 %v1228_v3  ;;  %1143 = vmatprep.subr.bf16.mxu1 %v1247_v12  ;;  %v1511_v7 = vld [vmem:[%s1540_s5] ss:$0 sm:$0xff]  ;;  %s1400_s5 = smov [#allocation12]  }
  0x4b   :  { %1113 = vmatprep.subr.bf16.mxu0 %v1229_v5  ;;  %s923_s21 = sshll.u32 %s1400_s5, 4  ;;  %s924_s21 = int_to_ptr.vmem [resolvable:$true] %s923_s21 }
  0x4c   :  { %s1365_s22 = scalar_lea.vmem %s924_s21, 1024  ;;  %p1370_p12 = scmp.lt.s32.totalorder %s924_s21, %s924_s21 }
  0x4d   :  { %1144 = vmatpush3.bf16.msra.mxu1 %v1247_v12  ;;  %p1366_p11 = scmp.ne.s32.totalorder %s924_s21, %s1365_s22  ;;  %p1371_p13 = scmp.lt.s32.totalorder %s1365_s22, %s1365_s22 }
  0x4e   :  { %1114 = vmatpush3.bf16.msra.mxu0 %v1229_v5  ;;  %1145 = vmatprep.subr.bf16.mxu1 %v1249_v14 }
  0x4f   :  { %1115 = vmatprep.subr.bf16.mxu0 %v1230_v6  ;;  %p1372_p0 = por %p1371_p13, %p1370_p12 }
  0x51   :  { %1146 = vmatpush3.bf16.msra.mxu1 %v1249_v14  ;;  %p1373_p1 = pnand %p1372_p0, %p1366_p11 }
  0x52   :  { %1116 = vmatpush3.bf16.msra.mxu0 %v1230_v6  ;;  %1147 = vmatprep.subr.bf16.mxu1 %v1251_v18 }
  0x53   :  { %1117 = vmatprep.subr.bf16.mxu0 %v1231_v9 }
  0x55   :  { %1148 = vmatpush3.bf16.msra.mxu1 %v1251_v18 }
  0x56   :  { %1118 = vmatpush3.bf16.msra.mxu0 %v1231_v9  ;;  %1149 = vmatprep.subr.bf16.mxu1 %v1253_v28 }
  0x57   :  { %1119 = vmatprep.subr.bf16.mxu0 %v1232_v11 }
  0x59   :  { %1150 = vmatpush3.bf16.msra.mxu1 %v1253_v28 }
  0x5a   :  { %1120 = vmatpush3.bf16.msra.mxu0 %v1232_v11  ;;  %1151 = vmatprep.subr.bf16.mxu1 %v1255_v30 }
  0x5b   :  { %1169 = vmatprep.subr.bf16.mxu0 %v1466_v13 }
  0x5d   :  { %1122 = vmatmul.mubr.bf16.vlgmr.msra.gmra.mxu0 %v1234_v15  ;;  %1152 = vmatpush3.bf16.msra.mxu1 %v1255_v30 }
  0x5e   :  { %1125 = vmatprep.mubr.bf16.mxu0 %v1235_v16  ;;  %1170 = vmatpush3.bf16.msra.mxu0 %v1466_v13 }
  0x5f   :  { %1171 = vmatprep.subr.bf16.mxu0 %v1468_v17  ;;  %1201 = vmatprep.subr.bf16.mxu1 %v1466_v13 }
  0x62   :  { %1172 = vmatpush3.bf16.msra.mxu0 %v1468_v17 }
  0x63   :  { %1173 = vmatprep.subr.bf16.mxu0 %v1473_v19 }
  0x65   :  { %1126 = vmatmul.mubr.bf16.gmra.mxu0 %v1236_v20 }
  0x66   :  { %1129 = vmatprep.mubr.bf16.mxu0 %v1237_v21  ;;  %1174 = vmatpush3.bf16.msra.mxu0 %v1473_v19 }
  0x67   :  { %1175 = vmatprep.subr.bf16.mxu0 %v1477_v22 }
  0x6a   :  { %1176 = vmatpush3.bf16.msra.mxu0 %v1477_v22 }
  0x6b   :  { %1177 = vmatprep.subr.bf16.mxu0 %v1481_v23 }
  0x6d   :  { %1130 = vmatmul.mubr.bf16.gmra.mxu0 %v1238_v24 }
  0x6e   :  { %1133 = vmatprep.mubr.bf16.mxu0 %v1239_v25  ;;  %1178 = vmatpush3.bf16.msra.mxu0 %v1481_v23 }
  0x6f   :  { %1179 = vmatprep.subr.bf16.mxu0 %v1485_v26 }
  0x72   :  { %1180 = vmatpush3.bf16.msra.mxu0 %v1485_v26 }
  0x73   :  { %1181 = vmatprep.subr.bf16.mxu0 %v1490_v29 }
  0x75   :  { %1134 = vmatmul.mubr.bf16.gmra.mxu0 %v1240_v27 }
  0x76   :  { %1182 = vmatpush3.bf16.msra.mxu0 %v1490_v29  ;;  %1185 = vmatprep.mubr.bf16.mxu0 %v1257_v32 }
  0x77   :  { %1183 = vmatprep.subr.bf16.mxu0 %v1256_v31 }
  0x7a   :  { %1184 = vmatpush3.bf16.msra.mxu0 %v1256_v31 }
  0x7d   :  { %1186 = vmatmul.mubr.bf16.vlgmr.msra.gmra.mxu0 %v1258_v33 }
  0x7e   :  { %1189 = vmatprep.mubr.bf16.mxu0 %v1259_v34 }
  0x85   :  { %1190 = vmatmul.mubr.bf16.gmra.mxu0 %v1260_v35 }
 0x11d   :  { %v1123_v36 = vpop.f32.mrf.mxu0 }
 0x11f   :  { %v291_v37 = vpop.f32.mrf.mxu0 }
 0x121   :  { %v1124_v38 = vpop.f32.mrf.mxu0 }
 0x122   :  { %v406_v41 = vpack.c.bf16 %v1124_v38, %v1123_v36 }
 0x123   :  { %v294_v39 = vpop.f32.mrf.mxu0 }
 0x124   :  { %v405_v40 = vpack.c.bf16 %v294_v39, %v291_v37 }
 0x125   :  { %v1127_v42 = vpop.f32.mrf.mxu0 }
 0x126   :  { %1153 = vmatprep.mubr.bf16.mxu1 %v405_v40 }
 0x127   :  { %v307_v43 = vpop.f32.mrf.mxu0  ;;  %1154 = vmatmul.mubr.bf16.vlgmr.msra.gmra.mxu1 %v406_v41 }
 0x128   :  { %1209 = vmatpush3.bf16.msra.mxu1 %v1466_v13 }
 0x129   :  { %v1128_v44 = vpop.f32.mrf.mxu0  ;;  %1202 = vmatprep.subr.bf16.mxu1 %v1468_v17 }
 0x12a   :  { %v408_v47 = vpack.c.bf16 %v1128_v44, %v1127_v42 }
 0x12b   :  { %v310_v45 = vpop.f32.mrf.mxu0 }
 0x12c   :  { %v407_v46 = vpack.c.bf16 %v310_v45, %v307_v43  ;;  %1210 = vmatpush3.bf16.msra.mxu1 %v1468_v17 }
 0x12d   :  { %v1131_v48 = vpop.f32.mrf.mxu0  ;;  %1203 = vmatprep.subr.bf16.mxu1 %v1473_v19 }
 0x12e   :  { %1157 = vmatprep.mubr.bf16.mxu1 %v407_v46 }
 0x12f   :  { %v323_v49 = vpop.f32.mrf.mxu0  ;;  %1158 = vmatmul.mubr.bf16.gmra.mxu1 %v408_v47 }
 0x130   :  { %1211 = vmatpush3.bf16.msra.mxu1 %v1473_v19 }
 0x131   :  { %v1132_v50 = vpop.f32.mrf.mxu0  ;;  %1204 = vmatprep.subr.bf16.mxu1 %v1477_v22 }
 0x132   :  { %v410_v53 = vpack.c.bf16 %v1132_v50, %v1131_v48 }
 0x133   :  { %v326_v51 = vpop.f32.mrf.mxu0 }
 0x134   :  { %v409_v52 = vpack.c.bf16 %v326_v51, %v323_v49  ;;  %1212 = vmatpush3.bf16.msra.mxu1 %v1477_v22 }
 0x135   :  { %v1135_v54 = vpop.f32.mrf.mxu0  ;;  %1205 = vmatprep.subr.bf16.mxu1 %v1481_v23 }
 0x136   :  { %1161 = vmatprep.mubr.bf16.mxu1 %v409_v52 }
 0x137   :  { %v339_v55 = vpop.f32.mrf.mxu0  ;;  %1162 = vmatmul.mubr.bf16.gmra.mxu1 %v410_v53 }
 0x138   :  { %1213 = vmatpush3.bf16.msra.mxu1 %v1481_v23 }
 0x139   :  { %v1136_v56 = vpop.f32.mrf.mxu0  ;;  %1206 = vmatprep.subr.bf16.mxu1 %v1485_v26 }
 0x13a   :  { %v412_v60 = vpack.c.bf16 %v1136_v56, %v1135_v54 }
 0x13b   :  { %v342_v57 = vpop.f32.mrf.mxu0 }
 0x13c   :  { %v411_v58 = vpack.c.bf16 %v342_v57, %v339_v55  ;;  %1214 = vmatpush3.bf16.msra.mxu1 %v1485_v26 }
 0x13d   :  { %1207 = vmatprep.subr.bf16.mxu1 %v1490_v29  ;;  %v1187_v0 = vpop.f32.mrf.mxu0 }
 0x13e   :  { %1165 = vmatprep.mubr.bf16.mxu1 %v411_v58 }
 0x13f   :  { %1166 = vmatmul.mubr.bf16.gmra.mxu1 %v412_v60  ;;  %v736_v1 = vpop.f32.mrf.mxu0 }
 0x140   :  { %1215 = vmatpush3.bf16.msra.mxu1 %v1490_v29  ;;  %1193 = vmatprep.mubr.bf16.mxu1 %v1261_v59 }
 0x141   :  { %1208 = vmatprep.subr.bf16.mxu1 %v1256_v31  ;;  %v1188_v2 = vpop.f32.mrf.mxu0 }
 0x143   :  { %v739_v3 = vpop.f32.mrf.mxu0 }
 0x144   :  { %1216 = vmatpush3.bf16.msra.mxu1 %v1256_v31 }
 0x145   :  { %v1191_v5 = vpop.f32.mrf.mxu0 }
 0x147   :  { %1194 = vmatmul.mubr.bf16.vlgmr.msra.gmra.mxu1 %v1262_v61  ;;  %v752_v11 = vpop.f32.mrf.mxu0 }
 0x148   :  { %1197 = vmatprep.mubr.bf16.mxu1 %v1263_v62 }
 0x149   :  { %v1192_v19 = vpop.f32.mrf.mxu0 }
 0x14b   :  { %v755_v30 = vpop.f32.mrf.mxu0 }
 0x14f   :  { %1198 = vmatmul.mubr.bf16.gmra.mxu1 %v1264_v63 }
 0x1e7   :  { %v1155_v4 = vpop.f32.mrf.mxu1 }
 0x1e8   :  { %v745_v6 = vadd.f32 %v1187_v0, %v1155_v4 }
 0x1e9   :  { %v543_v8 = vpop.f32.mrf.mxu1 }
 0x1ea   :  { %v737_v9 = vadd.f32 %v736_v1, %v543_v8  ;;  %v808_v12 = vadd.f32 %v1511_v7, %v745_v6 }
 0x1eb   :  { %v1156_v10 = vpop.f32.mrf.mxu1 }
 0x1ec   :  { %v748_v13 = vadd.f32 %v1188_v2, %v1156_v10  ;;  %v806_v15 = vadd.f32 %v1511_v7, %v737_v9  ;;  %v824_v20 = vmax.f32 %v808_v12, 0.0 }
 0x1ed   :  { %v546_v14 = vpop.f32.mrf.mxu1 }
 0x1ee   :  { %v809_v16 = vadd.f32 %v1511_v7, %v748_v13  ;;  %v740_v17 = vadd.f32 %v739_v3, %v546_v14  ;;  %v822_v25 = vmax.f32 %v806_v15, 0.0 }
 0x1ef   :  { %v1159_v18 = vpop.f32.mrf.mxu1 }
 0x1f0   :  { %v825_v21 = vmax.f32 %v809_v16, 0.0  ;;  %v807_v22 = vadd.f32 %v1511_v7, %v740_v17  ;;  %v761_v23 = vadd.f32 %v1191_v5, %v1159_v18 }
 0x1f1   :  { %v559_v24 = vpop.f32.mrf.mxu1 }
 0x1f2   :  { %v1018_v26 = vpack.c.bf16 %v825_v21, %v824_v20  ;;  %v823_v27 = vmax.f32 %v807_v22, 0.0  ;;  %v753_v28 = vadd.f32 %v752_v11, %v559_v24  ;;  %v812_v32 = vadd.f32 %v1511_v7, %v761_v23 }
 0x1f3   :  { %v1160_v29 = vpop.f32.mrf.mxu1 }
 0x1f4   :  { %1050 = vst [vmem:[#allocation12 + $0x8] sm:$0xff] %v1018_v26   ;;  %v1013_v31 = vpack.c.bf16 %v823_v27, %v822_v25  ;;  %v764_v33 = vadd.f32 %v1192_v19, %v1160_v29  ;;  %v810_v35 = vadd.f32 %v1511_v7, %v753_v28  ;;  %v828_v39 = vmax.f32 %v812_v32, 0.0 }
 0x1f5   :  { %v562_v34 = vpop.f32.mrf.mxu1 }
 0x1f6   :  { %1014 = vst [vmem:[#allocation12] sm:$0xff] %v1013_v31   ;;  %v813_v36 = vadd.f32 %v1511_v7, %v764_v33  ;;  %v756_v37 = vadd.f32 %v755_v30, %v562_v34  ;;  %v826_v43 = vmax.f32 %v810_v35, 0.0 }
 0x1f7   :  { %v1163_v38 = vpop.f32.mrf.mxu1 }
 0x1f8   :  { %v829_v40 = vmax.f32 %v813_v36, 0.0  ;;  %v811_v41 = vadd.f32 %v1511_v7, %v756_v37 }
 0x1f9   :  { %v575_v42 = vpop.f32.mrf.mxu1 }
 0x1fa   :  { %v1028_v44 = vpack.c.bf16 %v829_v40, %v828_v39  ;;  %v827_v45 = vmax.f32 %v811_v41, 0.0 }
 0x1fb   :  { %v1164_v46 = vpop.f32.mrf.mxu1 }
 0x1fc   :  { %1052 = vst [vmem:[#allocation12 + $0x18] sm:$0xff] %v1028_v44   ;;  %v1023_v47 = vpack.c.bf16 %v827_v45, %v826_v43 }
 0x1fd   :  { %v578_v48 = vpop.f32.mrf.mxu1 }
 0x1fe   :  { %1051 = vst [vmem:[#allocation12 + $0x10] sm:$0xff] %v1023_v47  }
 0x1ff   :  { %v1167_v49 = vpop.f32.mrf.mxu1 }
 0x201   :  { %v591_v50 = vpop.f32.mrf.mxu1 }
 0x203   :  { %v1168_v51 = vpop.f32.mrf.mxu1 }
 0x205   :  { %v594_v52 = vpop.f32.mrf.mxu1 }
 0x207   :  { %v1195_v53 = vpop.f32.mrf.mxu1 }
 0x208   :  { %v777_v54 = vadd.f32 %v1195_v53, %v1163_v38 }
 0x209   :  { %v768_v55 = vpop.f32.mrf.mxu1 }
 0x20a   :  { %v769_v56 = vadd.f32 %v768_v55, %v575_v42  ;;  %v816_v58 = vadd.f32 %v1511_v7, %v777_v54 }
 0x20b   :  { %v1196_v57 = vpop.f32.mrf.mxu1 }
 0x20c   :  { %v780_v59 = vadd.f32 %v1196_v57, %v1164_v46  ;;  %v814_v61 = vadd.f32 %v1511_v7, %v769_v56  ;;  %v832_v1 = vmax.f32 %v816_v58, 0.0 }
 0x20d   :  { %v771_v60 = vpop.f32.mrf.mxu1 }
 0x20e   :  { %v817_v62 = vadd.f32 %v1511_v7, %v780_v59  ;;  %v772_v63 = vadd.f32 %v771_v60, %v578_v48  ;;  %v830_v6 = vmax.f32 %v814_v61, 0.0 }
 0x20f   :  { %v1199_v0 = vpop.f32.mrf.mxu1 }
 0x210   :  { %v833_v2 = vmax.f32 %v817_v62, 0.0  ;;  %v815_v3 = vadd.f32 %v1511_v7, %v772_v63  ;;  %v793_v4 = vadd.f32 %v1199_v0, %v1167_v49 }
 0x211   :  { %v784_v5 = vpop.f32.mrf.mxu1 }
 0x212   :  { %v1038_v8 = vpack.c.bf16 %v833_v2, %v832_v1  ;;  %v831_v9 = vmax.f32 %v815_v3, 0.0  ;;  %v785_v10 = vadd.f32 %v784_v5, %v591_v50  ;;  %v820_v13 = vadd.f32 %v1511_v7, %v793_v4 }
 0x213   :  { %v1200_v11 = vpop.f32.mrf.mxu1 }
 0x214   :  { %1054 = vst [vmem:[#allocation12 + $0x28] sm:$0xff] %v1038_v8   ;;  %v1033_v12 = vpack.c.bf16 %v831_v9, %v830_v6  ;;  %v796_v14 = vadd.f32 %v1200_v11, %v1168_v51  ;;  %v818_v16 = vadd.f32 %v1511_v7, %v785_v10  ;;  %v836_v19 = vmax.f32 %v820_v13, 0.0 }
 0x215   :  { %v787_v15 = vpop.f32.mrf.mxu1 }
 0x216   :  { %1053 = vst [vmem:[#allocation12 + $0x20] sm:$0xff] %v1033_v12   ;;  %v821_v17 = vadd.f32 %v1511_v7, %v796_v14  ;;  %v788_v18 = vadd.f32 %v787_v15, %v594_v52  ;;  %v834_v22 = vmax.f32 %v818_v16, 0.0 }
 0x218   :  { %v837_v20 = vmax.f32 %v821_v17, 0.0  ;;  %v819_v21 = vadd.f32 %v1511_v7, %v788_v18 }
 0x21a   :  { %v1048_v23 = vpack.c.bf16 %v837_v20, %v836_v19  ;;  %v835_v24 = vmax.f32 %v819_v21, 0.0 }
 0x21c   :  { %1056 = vst [vmem:[#allocation12 + $0x38] sm:$0xff] %v1048_v23   ;;  %v1043_v25 = vpack.c.bf16 %v835_v24, %v834_v22 }
 0x21e   :  { %1055 = vst [vmem:[#allocation12 + $0x30] sm:$0xff] %v1043_v25  }
 0x21f   :  { %1376 = shalt.err (!%p1373_p1)
}
 0x220   :  { %929 = dma.vmem_to_hbm [thread:$0]  %s924_s21, 1024, %s1541_s6, [#allocation5], %s1395_s26, %s1395_s26, %s1396_s27  }
 0x221   :  { %1391 = dma.done.wait [#allocation5], 1024  }
 0x222   :  { %1392 = vsyncadd [#allocation5], 4294966272 }
 0x223   :  { %933 = vsyncpa [#allocation4], 1 }
 0x224   :  { %934 = vsyncpa [#allocation7], 1 }
 0x225   :  { %935 = vsyncpa [#allocation10], 1 }
 0x226   :  { %936 = vsyncpa [#allocation5], 1 }

</bundles_post_ra>
